<compile_context>
chip_gen: v7x
topology: tpu7x:2x2x1
jax: 0.10.0
libtpu: 0.0.40
codegen_flags: <defaults>
</compile_context>

<pallas_src>
import jax
import jax.numpy as jnp
from jax.experimental import pallas as pl
from jax.experimental.pallas import tpu as pltpu


def _round_up(a, b):
    return (a + b - 1) // b * b


# ---------------------------------------------------------------------------
# Kernel 1 factory: gc1 propagation + bias + ReLU + dropout, fused with the gc2
# "support" matmul so h1 never round-trips through HBM:
#   h1 = relu(adj @ s1 + b1) ; h1 = h1 * mask ;  s2 = h1 @ W2
# Grid = (adj row tiles, adj col tiles); reduction (col) axis last.
# ---------------------------------------------------------------------------
def _make_gc1_kernel(s1_resident, use_mask, tk):
    def kernel(*refs):
        if use_mask:
            adj_ref, s1_ref, w2_ref, b1_ref, mask_ref, s2_ref, acc_ref = refs
        else:
            adj_ref, s1_ref, w2_ref, b1_ref, s2_ref, acc_ref = refs
        k = pl.program_id(1)

        @pl.when(k == 0)
        def _():
            acc_ref[...] = jnp.zeros_like(acc_ref)

        if s1_resident:
            off = pl.multiple_of(k * tk, tk)
            s1_blk = s1_ref[pl.ds(off, tk), :]
        else:
            s1_blk = s1_ref[...]
        acc_ref[...] += jnp.dot(
            adj_ref[...], s1_blk, preferred_element_type=jnp.float32
        )

        @pl.when(k == pl.num_programs(1) - 1)
        def _():
            # Bias + ReLU in f32, then cast once; dropout mask (scale pre-folded)
            # applied in bf16 to keep the epilogue cheap on the VPU.
            h1 = jnp.maximum(acc_ref[...] + b1_ref[...], 0.0).astype(jnp.bfloat16)
            if use_mask:
                h1 = h1 * mask_ref[...]
            s2_ref[...] = jnp.dot(
                h1, w2_ref[...], preferred_element_type=jnp.float32
            ).astype(s2_ref.dtype)

    return kernel


# ---------------------------------------------------------------------------
# Kernel 2 factory: gc2 propagation + bias, fused with the Outlier_Valuator MLP.
#   emb   = adj @ s2 + b2
#   v     = relu(emb @ Wv1 + bv1)
#   score = sum(v * wv2_row, -1) + bv2     (VPU reduction; no [512,1] MXU op)
# Both outputs are lane-dense 128-multiple f32 slabs (no masked stores).
# ---------------------------------------------------------------------------
def _make_gc2_valuator_kernel(s2_resident, tk):
    def kernel(adj_ref, s2_ref, b2_ref, wv1_ref, bv1_ref, wv2_ref, bv2_ref,
               emb_ref, score_ref, acc_ref):
        k = pl.program_id(1)

        @pl.when(k == 0)
        def _():
            acc_ref[...] = jnp.zeros_like(acc_ref)

        if s2_resident:
            off = pl.multiple_of(k * tk, tk)
            s2_blk = s2_ref[pl.ds(off, tk), :]
        else:
            s2_blk = s2_ref[...]
        acc_ref[...] += jnp.dot(
            adj_ref[...], s2_blk, preferred_element_type=jnp.float32
        )

        @pl.when(k == pl.num_programs(1) - 1)
        def _():
            emb = acc_ref[...] + b2_ref[...]
            emb_ref[...] = emb
            v = jnp.maximum(
                jnp.dot(emb.astype(jnp.bfloat16), wv1_ref[...],
                        preferred_element_type=jnp.float32) + bv1_ref[...],
                0.0,
            )
            score = jnp.sum(v * wv2_ref[...], axis=-1, keepdims=True) + bv2_ref[...]
            score_ref[...] = jnp.broadcast_to(score, score_ref.shape)

    return kernel


def gdn_forward(x, adj, params, *, dropout_p, rng_key):
    N, nfeat = x.shape
    h2 = params["w1"].shape[1]      # 2 * nhid
    nhid = params["w2"].shape[1]

    f32, bf16 = jnp.float32, jnp.bfloat16

    # ---- wrapper-level padding so every kernel dim is lane/sublane friendly ----
    Fp = _round_up(nfeat, 128)
    H2p = _round_up(h2, 128)
    Hp = _round_up(nhid, 128)
    if N <= 1024:
        Np = _round_up(max(N, 8), 128)
        TM = TK = Np                 # single block (small-graph case)
    else:
        # Big adj tiles: 512 x 2048 bf16 = 2 MiB per step, amortizes the
        # ~0.35 us grid-step overhead and keeps grid_rows >= 2 for v7x megacore.
        TM = 512
        TK = min(2048, _round_up(N, 512))
        Np = _round_up(N, TK)        # TK is a multiple of TM -> divisible by both
    assert Np % TM == 0 and Np % TK == 0

    def pad2(a, r, c, dt):
        a = jnp.asarray(a, dt)
        return jnp.zeros((r, c), dt).at[: a.shape[0], : a.shape[1]].set(a)

    x_p = pad2(x, Np, Fp, bf16)
    adj_p = pad2(adj, Np, Np, bf16)
    w1_p = pad2(params["w1"], Fp, H2p, bf16)
    w2_p = pad2(params["w2"], H2p, Hp, bf16)
    wv1_p = pad2(params["wv1"], Hp, 512, bf16)
    b1_p = pad2(params["b1"].reshape(1, -1), 1, H2p, f32)
    b2_p = pad2(params["b2"].reshape(1, -1), 1, Hp, f32)
    bv1 = params["bv1"].reshape(1, -1).astype(f32)               # (1, 512)
    wv2_row = params["wv2"].reshape(-1)[None, :].astype(f32)     # (1, 512)
    bv2 = params["bv2"].reshape(1, 1).astype(f32)                # (1, 1)

    # ---- support s1 = x @ W1: plain XLA GEMM (already near-roofline), bf16
    # output since it is only ever consumed as an MXU operand. ----
    s1 = jnp.dot(x_p, w1_p, preferred_element_type=f32).astype(bf16)

    # ---- dropout mask (F.dropout training semantics): bf16, scale pre-folded,
    # skipped entirely at p == 0 so inference pays zero extra HBM bytes. ----
    p = float(dropout_p)
    use_mask = p > 0.0
    if not use_mask:
        mask = None
    elif p >= 1.0:                    # guard: avoid 1/(1-p) divide-by-zero
        mask = jnp.zeros((Np, H2p), bf16)
    else:
        keep = jax.random.bernoulli(rng_key, 1.0 - p, (Np, H2p))
        mask = (keep.astype(f32) * (1.0 / (1.0 - p))).astype(bf16)

    # ---- residency: hold s1 / s2 fully in VMEM when they fit, removing the
    # per-row-tile re-stream; fall back to streamed (k, 0) blocks otherwise. ----
    RESIDENT_BYTES = 12 * 1024 * 1024      # per copy (double-buffered by Pallas)
    s1_resident = (Np * H2p * 2) <= RESIDENT_BYTES
    s2_resident = (Np * Hp * 2) <= RESIDENT_BYTES

    grid_rows = Np // TM
    grid_cols = Np // TK
    cparams = pltpu.CompilerParams(
        dimension_semantics=("parallel", "arbitrary"),
        vmem_limit_bytes=48 * 1024 * 1024,   # fits v7x's 64 MiB with headroom
    )

    # ---- call 1: s2 = (relu(adj @ s1 + b1) * mask) @ W2 ----
    if s1_resident:
        s1_spec = pl.BlockSpec((Np, H2p), lambda i, k: (0, 0))
    else:
        s1_spec = pl.BlockSpec((TK, H2p), lambda i, k: (k, 0))
    gc1_in_specs = [
        pl.BlockSpec((TM, TK), lambda i, k: (i, k)),      # adj tile
        s1_spec,                                          # s1 (resident/streamed)
        pl.BlockSpec((H2p, Hp), lambda i, k: (0, 0)),     # W2 (resident)
        pl.BlockSpec((1, H2p), lambda i, k: (0, 0)),      # b1 (resident)
    ]
    gc1_inputs = [adj_p, s1, w2_p, b1_p]
    if use_mask:
        gc1_in_specs.append(pl.BlockSpec((TM, H2p), lambda i, k: (i, 0)))
        gc1_inputs.append(mask)

    s2 = pl.pallas_call(
        _make_gc1_kernel(s1_resident, use_mask, TK),
        out_shape=jax.ShapeDtypeStruct((Np, Hp), bf16),
        grid=(grid_rows, grid_cols),
        in_specs=gc1_in_specs,
        out_specs=pl.BlockSpec((TM, Hp), lambda i, k: (i, 0)),
        scratch_shapes=[pltpu.VMEM((TM, H2p), f32)],
        compiler_params=cparams,
    )(*gc1_inputs)

    # ---- call 2: emb = adj @ s2 + b2 ; score = valuator(emb) ----
    if s2_resident:
        s2_spec = pl.BlockSpec((Np, Hp), lambda i, k: (0, 0))
    else:
        s2_spec = pl.BlockSpec((TK, Hp), lambda i, k: (k, 0))

    emb_pad, score_pad = pl.pallas_call(
        _make_gc2_valuator_kernel(s2_resident, TK),
        out_shape=(
            jax.ShapeDtypeStruct((Np, Hp), f32),
            jax.ShapeDtypeStruct((Np, 128), f32),
        ),
        grid=(grid_rows, grid_cols),
        in_specs=[
            pl.BlockSpec((TM, TK), lambda i, k: (i, k)),      # adj tile
            s2_spec,                                          # s2 (resident/streamed)
            pl.BlockSpec((1, Hp), lambda i, k: (0, 0)),       # b2
            pl.BlockSpec((Hp, 512), lambda i, k: (0, 0)),     # Wv1 (resident)
            pl.BlockSpec((1, 512), lambda i, k: (0, 0)),      # bv1
            pl.BlockSpec((1, 512), lambda i, k: (0, 0)),      # wv2 row
            pl.BlockSpec((1, 1), lambda i, k: (0, 0)),        # bv2
        ],
        out_specs=(
            pl.BlockSpec((TM, Hp), lambda i, k: (i, 0)),
            pl.BlockSpec((TM, 128), lambda i, k: (i, 0)),
        ),
        scratch_shapes=[pltpu.VMEM((TM, Hp), f32)],
        compiler_params=cparams,
    )(adj_p, s2, b2_p, wv1_p, bv1, wv2_row, bv2)

    score = score_pad[:N, :1]
    emb = emb_pad[:N, :nhid]
    return score, emb


def gdn_reference(x, adj, params):
    # Pure-JAX reference mirroring the kernel's bf16-operand / f32-accumulate
    # numerics (dropout disabled) for a tight correctness comparison.
    bf, f32 = jnp.bfloat16, jnp.float32
    xb, ab = x.astype(bf), adj.astype(bf)
    s1 = jnp.dot(xb, params["w1"].astype(bf), preferred_element_type=f32)
    h1 = jnp.maximum(
        jnp.dot(ab, s1.astype(bf), preferred_element_type=f32) + params["b1"], 0.0)
    s2 = jnp.dot(h1.astype(bf), params["w2"].astype(bf), preferred_element_type=f32)
    emb = jnp.dot(ab, s2.astype(bf), preferred_element_type=f32) + params["b2"]
    v = jnp.maximum(
        jnp.dot(emb.astype(bf), params["wv1"].astype(bf),
                preferred_element_type=f32) + params["bv1"], 0.0)
    score = v @ params["wv2"] + params["bv2"]
    return score, emb


def init_params(key, nfeat, nhid):
    # Shapes mirror the PyTorch module:
    #   gc1: W [nfeat, 2*nhid], b [2*nhid]      (uniform +-1/sqrt(out))
    #   gc2: W [2*nhid, nhid],  b [nhid]
    #   Valuator: Linear(nhid, 512), Linear(512, 1)
    ks = jax.random.split(key, 8)

    def uni(k, shape, bound):
        return jax.random.uniform(k, shape, jnp.float32, -bound, bound)

    h2 = 2 * nhid
    b1 = 1.0 / (h2 ** 0.5)
    b2 = 1.0 / (nhid ** 0.5)
    bv1 = 1.0 / (nhid ** 0.5)
    bv2 = 1.0 / (512 ** 0.5)
    return {
        "w1": uni(ks[0], (nfeat, h2), b1),
        "b1": uni(ks[1], (1, h2), b1),
        "w2": uni(ks[2], (h2, nhid), b2),
        "b2": uni(ks[3], (1, nhid), b2),
        "wv1": uni(ks[4], (nhid, 512), bv1),
        "bv1": uni(ks[5], (1, 512), bv1),
        "wv2": uni(ks[6], (512, 1), bv2),
        "bv2": uni(ks[7], (1, 1), bv2),
    }


if __name__ == "__main__":
    N, nfeat, nhid = 16, 32, 16
    dropout = 0.5

    key = jax.random.PRNGKey(0)
    k_x, k_adj, k_p, k_drop = jax.random.split(key, 4)

    x = jax.random.normal(k_x, (N, nfeat), jnp.float32)
    # Dense row-normalized adjacency (torch.spmm on a dense-equivalent adj).
    a = (jax.random.uniform(k_adj, (N, N)) > 0.7).astype(jnp.float32)
    a = a + jnp.eye(N, dtype=jnp.float32)
    adj = a / jnp.sum(a, axis=1, keepdims=True)

    params = init_params(k_p, nfeat, nhid)

    # Correctness check against a pure-JAX reference with dropout disabled
    # (exercises the no-mask inference path).
    s0, e0 = gdn_forward(x, adj, params, dropout_p=0.0, rng_key=k_drop)
    s_ref, e_ref = gdn_reference(x, adj, params)
    assert s0.shape == (N, 1) and e0.shape == (N, nhid)
    assert jnp.allclose(s0, s_ref, atol=1e-2, rtol=1e-2)
    assert jnp.allclose(e0, e_ref, atol=1e-2, rtol=1e-2)

    # Run with the module's training-mode dropout (bf16 mask built from
    # jax.random with the 1/(1-p) scale pre-folded).
    pred_score, embeddings = gdn_forward(x, adj, params, dropout_p=dropout,
                                         rng_key=k_drop)
    jax.block_until_ready((pred_score, embeddings))
    assert pred_score.shape == (N, 1) and embeddings.shape == (N, nhid)
    assert bool(jnp.all(jnp.isfinite(pred_score)))
    assert bool(jnp.all(jnp.isfinite(embeddings)))

    print("KERNEL_OK")
</pallas_src>

<mosaic_0001>
module attributes {stable_mosaic.version = 11 : i64} {
  func.func @kernel(%arg0: i32, %arg1: i32, %arg2: memref<128x128xbf16, #tpu.memory_space<vmem>>, %arg3: memref<128x128xbf16, #tpu.memory_space<vmem>>, %arg4: memref<128x128xbf16, #tpu.memory_space<vmem>>, %arg5: memref<1x128xf32, #tpu.memory_space<vmem>>, %arg6: memref<128x128xbf16, #tpu.memory_space<vmem>>, %arg7: memref<128x128xf32, #tpu.memory_space<vmem>>) attributes {dimension_semantics = [#tpu.dimension_semantics<parallel>, #tpu.dimension_semantics<arbitrary>], iteration_bounds = array<i64: 1, 1>, scalar_prefetch = 0 : i64, scratch_operands = 1 : i64, tpu.core_type = #tpu.core_type<tc>, window_params = [{transform_indices = @transform_0, window_bounds = array<i64: 128, 128>}, {pipeline_mode = #tpu.pipeline_mode<synchronous>, transform_indices = @transform_1, window_bounds = array<i64: 128, 128>}, {pipeline_mode = #tpu.pipeline_mode<synchronous>, transform_indices = @transform_2, window_bounds = array<i64: 128, 128>}, {pipeline_mode = #tpu.pipeline_mode<synchronous>, transform_indices = @transform_3, window_bounds = array<i64: 1, 128>}, {transform_indices = @transform_4, window_bounds = array<i64: 128, 128>}]} {
    %c0_i32 = arith.constant 0 : i32
    %0 = arith.cmpi eq, %arg1, %c0_i32 : i32
    %1 = arith.extui %0 : i1 to i32
    %c0_i32_0 = arith.constant 0 : i32
    %2 = arith.cmpi ne, %1, %c0_i32_0 : i32
    scf.if %2 {
      %cst_9 = arith.constant 0.000000e+00 : f32
      %15 = vector.broadcast %cst_9 : f32 to vector<128x128xf32>
      %c0_10 = arith.constant 0 : index
      %c0_11 = arith.constant 0 : index
      %16 = vector.load %arg7[%c0_10, %c0_11] : memref<128x128xf32, #tpu.memory_space<vmem>>, vector<128x128xf32>
      tpu.vector_store %arg7[%c0_10, %c0_11], %15 {strides = array<i32>} : memref<128x128xf32, #tpu.memory_space<vmem>>, vector<128x128xf32>,
    } else {
    }
    %c128_i32 = arith.constant 128 : i32
    %3 = arith.muli %arg1, %c128_i32 : i32
    %4 = tpu.assume_multiple %3, 128 : i32
    %5 = arith.index_cast %4 : i32 to index
    %c0 = arith.constant 0 : index
    %6 = vector.load %arg3[%5, %c0] : memref<128x128xbf16, #tpu.memory_space<vmem>>, vector<128x128xbf16>
    %c0_1 = arith.constant 0 : index
    %c0_2 = arith.constant 0 : index
    %7 = vector.load %arg7[%c0_1, %c0_2] : memref<128x128xf32, #tpu.memory_space<vmem>>, vector<128x128xf32>
    %c0_3 = arith.constant 0 : index
    %c0_4 = arith.constant 0 : index
    %8 = vector.load %arg2[%c0_3, %c0_4] : memref<128x128xbf16, #tpu.memory_space<vmem>>, vector<128x128xbf16>
    %cst = arith.constant dense<0.000000e+00> : vector<128x128xf32>
    %9 = tpu.matmul %8, %6, %cst {dimension_numbers = #tpu.dot_dimension_numbers<[1], [0], [0], [1], [0, 0, 1, 1], [], []>} : vector<128x128xbf16>, vector<128x128xbf16>, vector<128x128xf32> -> vector<128x128xf32>
    %10 = arith.addf %7, %9 : vector<128x128xf32>
    %c0_5 = arith.constant 0 : index
    %c0_6 = arith.constant 0 : index
    %11 = vector.load %arg7[%c0_5, %c0_6] : memref<128x128xf32, #tpu.memory_space<vmem>>, vector<128x128xf32>
    tpu.vector_store %arg7[%c0_5, %c0_6], %10 {strides = array<i32>} : memref<128x128xf32, #tpu.memory_space<vmem>>, vector<128x128xf32>,
    %c0_i32_7 = arith.constant 0 : i32
    %12 = arith.cmpi eq, %arg1, %c0_i32_7 : i32
    %13 = arith.extui %12 : i1 to i32
    %c0_i32_8 = arith.constant 0 : i32
    %14 = arith.cmpi ne, %13, %c0_i32_8 : i32
    scf.if %14 {
      %c0_9 = arith.constant 0 : index
      %c0_10 = arith.constant 0 : index
      %15 = vector.load %arg7[%c0_9, %c0_10] : memref<128x128xf32, #tpu.memory_space<vmem>>, vector<128x128xf32>
      %c0_11 = arith.constant 0 : index
      %c0_12 = arith.constant 0 : index
      %16 = vector.load %arg5[%c0_11, %c0_12] : memref<1x128xf32, #tpu.memory_space<vmem>>, vector<1x128xf32>
      %17 = vector.broadcast %16 : vector<1x128xf32> to vector<128x128xf32>
      %18 = arith.addf %15, %17 : vector<128x128xf32>
      %cst_13 = arith.constant 0.000000e+00 : f32
      %19 = vector.broadcast %cst_13 : f32 to vector<128x128xf32>
      %20 = arith.maximumf %18, %19 : vector<128x128xf32>
      %21 = arith.truncf %20 : vector<128x128xf32> to vector<128x128xbf16>
      %c0_14 = arith.constant 0 : index
      %c0_15 = arith.constant 0 : index
      %22 = vector.load %arg4[%c0_14, %c0_15] : memref<128x128xbf16, #tpu.memory_space<vmem>>, vector<128x128xbf16>
      %cst_16 = arith.constant dense<0.000000e+00> : vector<128x128xf32>
      %23 = tpu.matmul %21, %22, %cst_16 {dimension_numbers = #tpu.dot_dimension_numbers<[1], [0], [0], [1], [0, 0, 1, 1], [], []>} : vector<128x128xbf16>, vector<128x128xbf16>, vector<128x128xf32> -> vector<128x128xf32>
      %24 = arith.truncf %23 : vector<128x128xf32> to vector<128x128xbf16>
      %c0_17 = arith.constant 0 : index
      %c0_18 = arith.constant 0 : index
      %25 = vector.load %arg6[%c0_17, %c0_18] : memref<128x128xbf16, #tpu.memory_space<vmem>>, vector<128x128xbf16>
      tpu.vector_store %arg6[%c0_17, %c0_18], %24 {strides = array<i32>} : memref<128x128xbf16, #tpu.memory_space<vmem>>, vector<128x128xbf16>,
    } else {
    }
    return
  }
  func.func @transform_0(%arg0: i32, %arg1: i32) -> (i32, i32) {
    %c0_i32 = arith.constant 0 : i32
    return %arg0, %arg1 : i32, i32
  }
  func.func @transform_1(%arg0: i32, %arg1: i32) -> (i32, i32) {
    %c0_i32 = arith.constant 0 : i32
    %c0_i32_0 = arith.constant 0 : i32
    %c0_i32_1 = arith.constant 0 : i32
    return %c0_i32, %c0_i32_0 : i32, i32
  }
  func.func @transform_2(%arg0: i32, %arg1: i32) -> (i32, i32) {
    %c0_i32 = arith.constant 0 : i32
    %c0_i32_0 = arith.constant 0 : i32
    %c0_i32_1 = arith.constant 0 : i32
    return %c0_i32, %c0_i32_0 : i32, i32
  }
  func.func @transform_3(%arg0: i32, %arg1: i32) -> (i32, i32) {
    %c0_i32 = arith.constant 0 : i32
    %c0_i32_0 = arith.constant 0 : i32
    %c0_i32_1 = arith.constant 0 : i32
    return %c0_i32, %c0_i32_0 : i32, i32
  }
  func.func @transform_4(%arg0: i32, %arg1: i32) -> (i32, i32) {
    %c0_i32 = arith.constant 0 : i32
    %c0_i32_0 = arith.constant 0 : i32
    return %arg0, %c0_i32 : i32, i32
  }
}

</mosaic_0001>

<bundles_post_ra>
// kernel: tpu_custom_call.1
= control target key start
LH: loop header
LB: loop body
LE: loop exit
PB: predicated region body
PF: predicated region fallthrough
CT: control target
= control target key end

     0   :  { %9 = vsyncpa [#allocation4], 0  ;;  %s1110_s0 = inlined_call_operand.hbm [shape: bf16[128,128], index: 0, kind: input, shape index: {}]   ;;  %s1111_s1 = inlined_call_operand.hbm [shape: bf16[128,128], index: 1, kind: input, shape index: {}]   ;;  %s1112_s2 = inlined_call_operand.hbm [shape: bf16[128,128], index: 2, kind: input, shape index: {}]   ;;  %s1113_s3 = inlined_call_operand.vmem [shape: f32[1,128], index: 3, kind: input, shape index: {}]   ;;  %s1114_s4 = inlined_call_operand.hbm [shape: bf16[128,128], index: 4, kind: output, shape index: {}]  }
   0x1   :  { %10 = vsyncpa [#allocation7], 0 }
   0x2   :  { %11 = vsyncpa [#allocation5], 0  ;;  %s1009_s15 = smov [#allocation6]   ;;  %s1010_s17 = smov [#allocation3]  }
   0x3   :  { %s29_s16 = sshll.u32 %s1009_s15, 4  ;;  %s17_s18 = sshll.u32 %s1010_s17, 4  ;;  %s30_s16 = int_to_ptr.vmem [resolvable:$true] %s29_s16  ;;  %s1040_s18 = int_to_ptr.vmem [resolvable:$true] %s17_s18 }
   0x4   :  { %s915_s21 = scalar_lea.hbm %s1111_s1, 1024 }
   0x5   :  { %p916_p0 = scmp.ne.s32.totalorder %s1111_s1, %s915_s21  ;;  %p919_p1 = scmp.lt.u32.totalorder %s915_s21, %s1111_s1 }
   0x7   :  { %p921_p2 = pnand %p919_p1, %p916_p0 }
   0x9   :  { %924 = shalt.err (!%p921_p2)
}
   0xa   :  { %s925_s26 = scalar_lea.vmem %s30_s16, 1024  ;;  %p930_p4 = scmp.lt.s32.totalorder %s30_s16, %s30_s16 }
   0xb   :  { %p926_p3 = scmp.ne.s32.totalorder %s30_s16, %s925_s26  ;;  %p931_p5 = scmp.lt.s32.totalorder %s925_s26, %s925_s26 }
   0xd   :  { %p932_p6 = por %p931_p5, %p930_p4 }
   0xf   :  { %p933_p7 = pnand %p932_p6, %p926_p3 }
  0x11   :  { %936 = shalt.err (!%p933_p7)
}
  0x12   :  { %s1011_s27 = smov 64   ;;  %s1012_s28 = smov 4  }
  0x13   :  { %35 = dma.hbm_to_vmem [thread:$0]  %s1111_s1, 1024, %s30_s16, [#allocation7], %s1011_s27, %s1011_s27, %s1012_s28  }
  0x14   :  { %s937_s7 = scalar_lea.hbm %s1110_s0, 1024 }
  0x15   :  { %p938_p8 = scmp.ne.s32.totalorder %s1110_s0, %s937_s7  ;;  %p941_p9 = scmp.lt.u32.totalorder %s937_s7, %s1110_s0 }
  0x17   :  { %p943_p10 = pnand %p941_p9, %p938_p8 }
  0x19   :  { %946 = shalt.err (!%p943_p10)
}
  0x1a   :  { %s947_s12 = scalar_lea.vmem %s1040_s18, 1024  ;;  %p952_p12 = scmp.lt.s32.totalorder %s1040_s18, %s1040_s18 }
  0x1b   :  { %p948_p11 = scmp.ne.s32.totalorder %s1040_s18, %s947_s12  ;;  %p953_p13 = scmp.lt.s32.totalorder %s947_s12, %s947_s12 }
  0x1d   :  { %p954_p0 = por %p953_p13, %p952_p12 }
  0x1f   :  { %p955_p1 = pnand %p954_p0, %p948_p11 }
  0x21   :  { %958 = shalt.err (!%p955_p1)
}
  0x22   :  { %23 = dma.hbm_to_vmem [thread:$0]  %s1110_s0, 1024, %s1040_s18, [#allocation4], %s1011_s27, %s1011_s27, %s1012_s28  }
  0x23   :  { %s1013_s14 = smov [#allocation8]   ;;  %s959_s19 = scalar_lea.hbm %s1112_s2, 1024 }
  0x24   :  { %s41_s15 = sshll.u32 %s1013_s14, 4  ;;  %p960_p2 = scmp.ne.s32.totalorder %s1112_s2, %s959_s19  ;;  %s42_s15 = int_to_ptr.vmem [resolvable:$true] %s41_s15 }
  0x25   :  { %p963_p3 = scmp.lt.u32.totalorder %s959_s19, %s1112_s2 }
  0x27   :  { %p965_p4 = pnand %p963_p3, %p960_p2 }
  0x29   :  { %968 = shalt.err (!%p965_p4)
}
  0x2a   :  { %s969_s24 = scalar_lea.vmem %s42_s15, 1024  ;;  %p974_p6 = scmp.lt.s32.totalorder %s42_s15, %s42_s15 }
  0x2b   :  { %p970_p5 = scmp.ne.s32.totalorder %s42_s15, %s969_s24  ;;  %p975_p7 = scmp.lt.s32.totalorder %s969_s24, %s969_s24 }
  0x2d   :  { %p976_p8 = por %p975_p7, %p974_p6 }
  0x2f   :  { %p977_p9 = pnand %p976_p8, %p970_p5 }
  0x31   :  { %980 = shalt.err (!%p977_p9)
}
  0x32   :  { %47 = dma.hbm_to_vmem [thread:$0]  %s1112_s2, 1024, %s42_s15, [#allocation7], %s1011_s27, %s1011_s27, %s1012_s28  }
  0x33   :  { %1003 = dma.done.wait [#allocation4], 1024  }
  0x34   :  { %1004 = vsyncadd [#allocation4], 4294966272 }
  0x35   :  { %1005 = dma.done.wait [#allocation7], 2048  }
  0x36   :  { %1006 = vsyncadd [#allocation7], 4294965248  ;;  %v891_v0 = vld [vmem:[#allocation6] sm:$0xff]   ;;  %v892_v1 = vld [vmem:[#allocation6 + $0x8] sm:$0xff]  }
  0x37   :  { %821 = vmatprep.subr.bf16.mxu0 %v891_v0  ;;  %v893_v2 = vld [vmem:[#allocation6 + $0x10] sm:$0xff]   ;;  %v894_v3 = vld [vmem:[#allocation6 + $0x18] sm:$0xff]   ;;  %v899_v4 = vld [vmem:[#allocation3] sm:$0xff]  }
  0x38   :  { %822 = vmatpush3.bf16.msra.mxu0 %v891_v0  ;;  %837 = vmatprep.mubr.bf16.mxu0 %v899_v4  ;;  %v895_v5 = vld [vmem:[#allocation6 + $0x20] sm:$0xff]   ;;  %v896_v6 = vld [vmem:[#allocation6 + $0x28] sm:$0xff]   ;;  %v897_v9 = vld [vmem:[#allocation6 + $0x30] sm:$0xff]  }
  0x39   :  { %823 = vmatprep.subr.bf16.mxu0 %v892_v1  ;;  %v907_v7 = vld [vmem:[#allocation8] sm:$0xff]   ;;  %v908_v8 = vld [vmem:[#allocation8 + $0x8] sm:$0xff]   ;;  %v909_v10 = vld [vmem:[#allocation8 + $0x10] sm:$0xff]  }
  0x3a   :  { %853 = vmatprep.subr.bf16.mxu1 %v907_v7  ;;  %v898_v11 = vld [vmem:[#allocation6 + $0x38] sm:$0xff]   ;;  %v911_v13 = vld [vmem:[#allocation8 + $0x20] sm:$0xff]   ;;  %v900_v14 = vld [vmem:[#allocation3 + $0x8] sm:$0xff]  }
  0x3b   :  { %854 = vmatpush3.bf16.msra.mxu1 %v907_v7  ;;  %v910_v12 = vld [vmem:[#allocation8 + $0x18] sm:$0xff]   ;;  %v901_v15 = vld [vmem:[#allocation3 + $0x10] sm:$0xff]   ;;  %v912_v16 = vld [vmem:[#allocation8 + $0x28] sm:$0xff]  }
  0x3c   :  { %824 = vmatpush3.bf16.msra.mxu0 %v892_v1  ;;  %855 = vmatprep.subr.bf16.mxu1 %v908_v8  ;;  %v902_v17 = vld [vmem:[#allocation3 + $0x18] sm:$0xff]   ;;  %v903_v18 = vld [vmem:[#allocation3 + $0x20] sm:$0xff]   ;;  %v904_v19 = vld [vmem:[#allocation3 + $0x28] sm:$0xff]  }
  0x3d   :  { %825 = vmatprep.subr.bf16.mxu0 %v893_v2  ;;  %v905_v20 = vld [vmem:[#allocation3 + $0x30] sm:$0xff]   ;;  %v906_v21 = vld [vmem:[#allocation3 + $0x38] sm:$0xff]   ;;  %v701_v24 = vld [vmem:[%s1113_s3] ss:$0 sm:$0xff]  ;;  %s1014_s3 = smov [#allocation9]  }
  0x3e   :  { %v913_v22 = vld [vmem:[#allocation8 + $0x30] sm:$0xff]   ;;  %v914_v23 = vld [vmem:[#allocation8 + $0x38] sm:$0xff]   ;;  %s670_s26 = sshll.u32 %s1014_s3, 4  ;;  %s671_s26 = int_to_ptr.vmem [resolvable:$true] %s670_s26 }
  0x3f   :  { %856 = vmatpush3.bf16.msra.mxu1 %v908_v8  ;;  %s981_s29 = scalar_lea.vmem %s671_s26, 1024  ;;  %p986_p11 = scmp.lt.s32.totalorder %s671_s26, %s671_s26 }
  0x40   :  { %826 = vmatpush3.bf16.msra.mxu0 %v893_v2  ;;  %857 = vmatprep.subr.bf16.mxu1 %v909_v10  ;;  %p982_p10 = scmp.ne.s32.totalorder %s671_s26, %s981_s29  ;;  %p987_p12 = scmp.lt.s32.totalorder %s981_s29, %s981_s29 }
  0x41   :  { %827 = vmatprep.subr.bf16.mxu0 %v894_v3 }
  0x42   :  { %p988_p13 = por %p987_p12, %p986_p11 }
  0x43   :  { %858 = vmatpush3.bf16.msra.mxu1 %v909_v10 }
  0x44   :  { %828 = vmatpush3.bf16.msra.mxu0 %v894_v3  ;;  %859 = vmatprep.subr.bf16.mxu1 %v910_v12  ;;  %p989_p0 = pnand %p988_p13, %p982_p10 }
  0x45   :  { %829 = vmatprep.subr.bf16.mxu0 %v895_v5 }
  0x47   :  { %860 = vmatpush3.bf16.msra.mxu1 %v910_v12 }
  0x48   :  { %830 = vmatpush3.bf16.msra.mxu0 %v895_v5  ;;  %861 = vmatprep.subr.bf16.mxu1 %v911_v13 }
  0x49   :  { %831 = vmatprep.subr.bf16.mxu0 %v896_v6 }
  0x4b   :  { %862 = vmatpush3.bf16.msra.mxu1 %v911_v13 }
  0x4c   :  { %832 = vmatpush3.bf16.msra.mxu0 %v896_v6  ;;  %863 = vmatprep.subr.bf16.mxu1 %v912_v16 }
  0x4d   :  { %833 = vmatprep.subr.bf16.mxu0 %v897_v9 }
  0x4f   :  { %864 = vmatpush3.bf16.msra.mxu1 %v912_v16 }
  0x50   :  { %834 = vmatpush3.bf16.msra.mxu0 %v897_v9  ;;  %865 = vmatprep.subr.bf16.mxu1 %v913_v22 }
  0x51   :  { %835 = vmatprep.subr.bf16.mxu0 %v898_v11 }
  0x53   :  { %866 = vmatpush3.bf16.msra.mxu1 %v913_v22 }
  0x54   :  { %836 = vmatpush3.bf16.msra.mxu0 %v898_v11  ;;  %867 = vmatprep.subr.bf16.mxu1 %v914_v23 }
  0x57   :  { %838 = vmatmul.mubr.bf16.vlgmr.msra.gmra.mrb[0].mxu0 %v900_v14  ;;  %868 = vmatpush3.bf16.msra.mxu1 %v914_v23 }
  0x58   :  { %841 = vmatprep.mubr.bf16.mxu0 %v901_v15 }
  0x5f   :  { %842 = vmatmul.mubr.bf16.gmra.mrb[4].mxu0 %v902_v17 }
  0x60   :  { %845 = vmatprep.mubr.bf16.mxu0 %v903_v18 }
  0x67   :  { %846 = vmatmul.mubr.bf16.gmra.mrb[8].mxu0 %v904_v19 }
  0x68   :  { %849 = vmatprep.mubr.bf16.mxu0 %v905_v20 }
  0x6f   :  { %850 = vmatmul.mubr.bf16.gmra.mrb[12].mxu0 %v906_v21 }
 0x12a   :  { %v839_v25 = vpop.f32.mrb[0].mxu0 }
 0x12b   :  { %v386_v26 = vadd.f32 %v839_v25, %v701_v24  ;;  %v263_v27 = vpop.f32.mrb[1].mxu0 }
 0x12c   :  { %v384_v28 = vadd.f32 %v701_v24, %v263_v27  ;;  %v840_v29 = vpop.f32.mrb[2].mxu0 }
 0x12d   :  { %v387_v30 = vadd.f32 %v840_v29, %v701_v24  ;;  %v266_v31 = vpop.f32.mrb[3].mxu0  ;;  %v402_v33 = vmax.f32 %v386_v26, 0.0 }
 0x12e   :  { %v385_v32 = vadd.f32 %v701_v24, %v266_v31  ;;  %v400_v35 = vmax.f32 %v384_v28, 0.0 }
 0x12f   :  { %v403_v34 = vmax.f32 %v387_v30, 0.0 }
 0x130   :  { %v401_v36 = vmax.f32 %v385_v32, 0.0 }
 0x131   :  { %v417_v37 = vpack.c.bf16 %v403_v34, %v402_v33 }
 0x132   :  { %v843_v38 = vpop.f32.mrb[4].mxu0  ;;  %v416_v39 = vpack.c.bf16 %v401_v36, %v400_v35 }
 0x133   :  { %v390_v40 = vadd.f32 %v843_v38, %v701_v24  ;;  %v279_v41 = vpop.f32.mrb[5].mxu0 }
 0x134   :  { %v388_v42 = vadd.f32 %v701_v24, %v279_v41  ;;  %v844_v43 = vpop.f32.mrb[6].mxu0  ;;  %869 = vmatprep.mubr.bf16.mxu1 %v416_v39 }
 0x135   :  { %v391_v44 = vadd.f32 %v844_v43, %v701_v24  ;;  %v282_v45 = vpop.f32.mrb[7].mxu0  ;;  %870 = vmatmul.mubr.bf16.vlgmr.msra.gmra.mrb[0].mxu1 %v417_v37  ;;  %v406_v47 = vmax.f32 %v390_v40, 0.0 }
 0x136   :  { %v389_v46 = vadd.f32 %v701_v24, %v282_v45  ;;  %v404_v49 = vmax.f32 %v388_v42, 0.0 }
 0x137   :  { %v407_v48 = vmax.f32 %v391_v44, 0.0 }
 0x138   :  { %v405_v50 = vmax.f32 %v389_v46, 0.0 }
 0x139   :  { %v419_v51 = vpack.c.bf16 %v407_v48, %v406_v47 }
 0x13a   :  { %v418_v52 = vpack.c.bf16 %v405_v50, %v404_v49  ;;  %v847_v53 = vpop.f32.mrb[8].mxu0 }
 0x13b   :  { %v394_v54 = vadd.f32 %v847_v53, %v701_v24  ;;  %v295_v55 = vpop.f32.mrb[9].mxu0 }
 0x13c   :  { %v392_v56 = vadd.f32 %v701_v24, %v295_v55  ;;  %v848_v57 = vpop.f32.mrb[10].mxu0  ;;  %873 = vmatprep.mubr.bf16.mxu1 %v418_v52 }
 0x13d   :  { %v395_v58 = vadd.f32 %v848_v57, %v701_v24  ;;  %v298_v59 = vpop.f32.mrb[11].mxu0  ;;  %874 = vmatmul.mubr.bf16.gmra.mrb[4].mxu1 %v419_v51  ;;  %v410_v61 = vmax.f32 %v394_v54, 0.0 }
 0x13e   :  { %v393_v60 = vadd.f32 %v701_v24, %v298_v59  ;;  %v408_v63 = vmax.f32 %v392_v56, 0.0 }
 0x13f   :  { %v411_v62 = vmax.f32 %v395_v58, 0.0 }
 0x140   :  { %v409_v0 = vmax.f32 %v393_v60, 0.0 }
 0x141   :  { %v421_v1 = vpack.c.bf16 %v411_v62, %v410_v61 }
 0x142   :  { %v420_v2 = vpack.c.bf16 %v409_v0, %v408_v63  ;;  %v851_v3 = vpop.f32.mrb[12].mxu0 }
 0x143   :  { %v398_v4 = vadd.f32 %v851_v3, %v701_v24  ;;  %v311_v5 = vpop.f32.mrb[13].mxu0 }
 0x144   :  { %v396_v6 = vadd.f32 %v701_v24, %v311_v5  ;;  %v852_v7 = vpop.f32.mrb[14].mxu0  ;;  %877 = vmatprep.mubr.bf16.mxu1 %v420_v2 }
 0x145   :  { %v399_v8 = vadd.f32 %v852_v7, %v701_v24  ;;  %v314_v9 = vpop.f32.mrb[15].mxu0  ;;  %878 = vmatmul.mubr.bf16.gmra.mrb[8].mxu1 %v421_v1  ;;  %v414_v11 = vmax.f32 %v398_v4, 0.0 }
 0x146   :  { %v397_v10 = vadd.f32 %v701_v24, %v314_v9  ;;  %v412_v13 = vmax.f32 %v396_v6, 0.0 }
 0x147   :  { %v415_v12 = vmax.f32 %v399_v8, 0.0 }
 0x148   :  { %v413_v14 = vmax.f32 %v397_v10, 0.0 }
 0x149   :  { %v423_v15 = vpack.c.bf16 %v415_v12, %v414_v11 }
 0x14a   :  { %v422_v16 = vpack.c.bf16 %v413_v14, %v412_v13 }
 0x14c   :  { %881 = vmatprep.mubr.bf16.mxu1 %v422_v16 }
 0x14d   :  { %882 = vmatmul.mubr.bf16.gmra.mrb[12].mxu1 %v423_v15 }
 0x208   :  { %v871_v17 = vpop.f32.mrb[0].mxu1 }
 0x209   :  { %v522_v18 = vpop.f32.mrb[1].mxu1 }
 0x20a   :  { %v872_v19 = vpop.f32.mrb[2].mxu1 }
 0x20b   :  { %v750_v20 = vpack.c.bf16 %v872_v19, %v871_v17  ;;  %v525_v21 = vpop.f32.mrb[3].mxu1 }
 0x20c   :  { %v745_v22 = vpack.c.bf16 %v525_v21, %v522_v18 }
 0x20d   :  { %782 = vst [vmem:[#allocation9 + $0x8] sm:$0xff] %v750_v20  }
 0x20e   :  { %746 = vst [vmem:[#allocation9] sm:$0xff] %v745_v22  }
 0x210   :  { %v875_v23 = vpop.f32.mrb[4].mxu1 }
 0x211   :  { %v538_v25 = vpop.f32.mrb[5].mxu1 }
 0x212   :  { %v876_v26 = vpop.f32.mrb[6].mxu1 }
 0x213   :  { %v760_v24 = vpack.c.bf16 %v876_v26, %v875_v23  ;;  %v541_v27 = vpop.f32.mrb[7].mxu1 }
 0x214   :  { %v755_v28 = vpack.c.bf16 %v541_v27, %v538_v25 }
 0x215   :  { %784 = vst [vmem:[#allocation9 + $0x18] sm:$0xff] %v760_v24  }
 0x216   :  { %783 = vst [vmem:[#allocation9 + $0x10] sm:$0xff] %v755_v28  }
 0x218   :  { %v879_v29 = vpop.f32.mrb[8].mxu1 }
 0x219   :  { %v554_v30 = vpop.f32.mrb[9].mxu1 }
 0x21a   :  { %v880_v31 = vpop.f32.mrb[10].mxu1 }
 0x21b   :  { %v770_v32 = vpack.c.bf16 %v880_v31, %v879_v29  ;;  %v557_v33 = vpop.f32.mrb[11].mxu1 }
 0x21c   :  { %v765_v34 = vpack.c.bf16 %v557_v33, %v554_v30 }
 0x21d   :  { %786 = vst [vmem:[#allocation9 + $0x28] sm:$0xff] %v770_v32  }
 0x21e   :  { %785 = vst [vmem:[#allocation9 + $0x20] sm:$0xff] %v765_v34  }
 0x220   :  { %v883_v35 = vpop.f32.mrb[12].mxu1 }
 0x221   :  { %v570_v36 = vpop.f32.mrb[13].mxu1 }
 0x222   :  { %v884_v37 = vpop.f32.mrb[14].mxu1 }
 0x223   :  { %v780_v38 = vpack.c.bf16 %v884_v37, %v883_v35  ;;  %v573_v39 = vpop.f32.mrb[15].mxu1 }
 0x224   :  { %v775_v40 = vpack.c.bf16 %v573_v39, %v570_v36 }
 0x225   :  { %788 = vst [vmem:[#allocation9 + $0x38] sm:$0xff] %v780_v38  }
 0x226   :  { %787 = vst [vmem:[#allocation9 + $0x30] sm:$0xff] %v775_v40  }
 0x227   :  { %992 = shalt.err (!%p989_p0)
}
 0x228   :  { %s993_s6 = scalar_lea.hbm %s1114_s4, 1024 }
 0x229   :  { %p994_p1 = scmp.ne.s32.totalorder %s1114_s4, %s993_s6  ;;  %p997_p2 = scmp.lt.u32.totalorder %s993_s6, %s1114_s4 }
 0x22b   :  { %p999_p3 = pnand %p997_p2, %p994_p1 }
 0x22d   :  { %1002 = shalt.err (!%p999_p3)
}
 0x22e   :  { %676 = dma.vmem_to_hbm [thread:$0]  %s671_s26, 1024, %s1114_s4, [#allocation5], %s1011_s27, %s1011_s27, %s1012_s28  }
 0x22f   :  { %1007 = dma.done.wait [#allocation5], 1024  }
 0x230   :  { %1008 = vsyncadd [#allocation5], 4294966272 }
 0x231   :  { %680 = vsyncpa [#allocation4], 1 }
 0x232   :  { %681 = vsyncpa [#allocation7], 1 }
 0x233   :  { %682 = vsyncpa [#allocation5], 1 }

</bundles_post_ra>
